<compile_context>
chip_gen: v7x
topology: tpu7x:2x2x1
jax: 0.10.0
libtpu: 0.0.40
codegen_flags: <defaults>
</compile_context>

<pallas_src>
import functools

import jax
import jax.numpy as jnp
from jax.experimental import pallas as pl
from jax.experimental.pallas import tpu as pltpu

_SUBLANE = 8
_LANE = 128
_NEG_BIG = -1e30  # padded-logit bias: exp(-1e30 - max) == 0, never NaN/overflow in the sum
_VMEM_BUDGET = 24 * 1024 * 1024  # conservative per-call working-set target (fits v7x default)


def _round_up(v, m):
    return (v + m - 1) // m * m


def _linear_logsoftmax_kernel(x_ref, w_ref, b_ref, o_ref):
    # x_ref: (block_b, thetash) bf16/f32   w_ref: (thetash, out_p)   b_ref: (1, out_p) f32
    # MXU matmul with f32 accumulation.
    logits = jnp.dot(x_ref[...], w_ref[...], preferred_element_type=jnp.float32)
    logits = logits + b_ref[...]                       # bias broadcast over batch rows (f32)
    # Numerically stable log_softmax over the class (lane) dimension.
    m = jnp.max(logits, axis=-1, keepdims=True)        # padded cols are ~-1e30, never the max
    shifted = logits - m
    denom = jnp.sum(jnp.exp(shifted), axis=-1, keepdims=True)   # >= 1 (row max contributes 1)
    o_ref[...] = (shifted - jnp.log(denom)).astype(o_ref.dtype)


def _pick_block_b(B, thetash, out_p, compute_bytes):
    """Largest batch tile (<=512, multiple of 8) whose double-buffered x/out tiles
    plus the resident weight fit a conservative VMEM budget."""
    w_bytes = thetash * out_p * compute_bytes * 2 + out_p * 4 * 2  # weight + bias (2 bufs each)
    best = _SUBLANE
    cand = _SUBLANE
    while cand <= 512:
        tile_bytes = 2 * cand * thetash * compute_bytes + 2 * cand * out_p * 4  # x + out, 2 bufs
        if w_bytes + tile_bytes > _VMEM_BUDGET:
            break
        best = cand
        cand += _SUBLANE
    return min(best, _round_up(B, _SUBLANE))


@functools.partial(jax.jit, static_argnames=("block_b", "compute_dtype"))
def task_model2_forward(x, w_t, b, *, block_b=None, compute_dtype=jnp.bfloat16):
    """log_softmax(x @ w_t + b, axis=1).

    x:   (B, thetash) f32
    w_t: (thetash, out) f32  -- transpose of the PyTorch Linear weight
    b:   (out,) f32
    """
    B, thetash = x.shape
    out = w_t.shape[1]

    # Lane-dense class dimension.
    out_p = _round_up(out, _LANE)

    compute_bytes = jnp.dtype(compute_dtype).itemsize

    # Batch tile: multiple of 8 sublanes, large enough to amortize the ~0.35us
    # per-grid-step overhead, small enough to bound VMEM (and give v7x >=2 tiles
    # to shard once B is non-toy).
    if block_b is None:
        block_b = _pick_block_b(B, thetash, out_p, compute_bytes)
    block_b = max(_SUBLANE, _round_up(block_b, _SUBLANE))
    B_p = _round_up(B, block_b)

    xc = x.astype(compute_dtype)
    wc = w_t.astype(compute_dtype)
    if B_p != B:
        xc = jnp.pad(xc, ((0, B_p - B), (0, 0)))
    if out_p != out:
        wc = jnp.pad(wc, ((0, 0), (0, out_p - out)))
        b2d = jnp.concatenate(
            [b.astype(jnp.float32),
             jnp.full((out_p - out,), _NEG_BIG, jnp.float32)]
        ).reshape(1, out_p)
    else:
        b2d = b.astype(jnp.float32).reshape(1, out_p)

    n_tiles = B_p // block_b
    cost = pl.CostEstimate(
        flops=2 * B_p * thetash * out_p,
        transcendentals=B_p * out_p + B_p,  # exp per logit + log per row
        bytes_accessed=(B_p * thetash * compute_bytes          # x read
                        + n_tiles * thetash * out_p * compute_bytes  # weight per tile
                        + n_tiles * out_p * 4                    # bias per tile
                        + B_p * out_p * 4),                      # out write
    )

    y = pl.pallas_call(
        _linear_logsoftmax_kernel,
        out_shape=jax.ShapeDtypeStruct((B_p, out_p), jnp.float32),
        grid_spec=pltpu.PrefetchScalarGridSpec(
            num_scalar_prefetch=0,
            grid=(n_tiles,),
            in_specs=[
                pl.BlockSpec((block_b, thetash), lambda i: (i, 0)),  # x batch tile
                pl.BlockSpec((thetash, out_p), lambda i: (0, 0)),    # full (padded) weight
                pl.BlockSpec((1, out_p), lambda i: (0, 0)),          # bias row (f32)
            ],
            out_specs=pl.BlockSpec((block_b, out_p), lambda i: (i, 0)),
        ),
        compiler_params=pltpu.CompilerParams(
            # batch tiles are independent -> megacore / 2-TC sharding on v7x
            dimension_semantics=("parallel",),
        ),
        cost_estimate=cost,
    )(xc, wc, b2d)

    return y[:B, :out]


def init_params(key, thetash, out):
    """Deterministic init mimicking nn.Linear default (uniform +/- 1/sqrt(thetash))."""
    kw, kb = jax.random.split(key)
    bound = 1.0 / jnp.sqrt(jnp.float32(thetash))
    # PyTorch weight shape is (out, thetash); we store the transpose (thetash, out).
    w_t = jax.random.uniform(kw, (thetash, out), jnp.float32, -bound, bound)
    b = jax.random.uniform(kb, (out,), jnp.float32, -bound, bound)
    return w_t, b


if __name__ == "__main__":
    # TaskModel2(out=10, thetash=32), small batch.
    B, thetash, out = 8, 32, 10

    key = jax.random.PRNGKey(0)
    kx, kp = jax.random.split(key)
    x = jax.random.normal(kx, (B, thetash), jnp.float32)
    w_t, b = init_params(kp, thetash, out)

    y = task_model2_forward(x, w_t, b)          # default: bf16 inputs, f32 accumulation
    y = jax.block_until_ready(y)

    # Reference in plain JAX with the same bf16 input quantization (products are
    # exact in f32, so this isolates kernel correctness from the dtype choice).
    x_q = x.astype(jnp.bfloat16).astype(jnp.float32)
    w_q = w_t.astype(jnp.bfloat16).astype(jnp.float32)
    ref = jax.nn.log_softmax(x_q @ w_q + b, axis=1)

    assert y.shape == (B, out)
    assert jnp.allclose(y, ref, atol=1e-4, rtol=1e-4), float(jnp.max(jnp.abs(y - ref)))

    print("KERNEL_OK")
</pallas_src>

<mosaic_0001>
module attributes {stable_mosaic.version = 11 : i64} {
  func.func @_linear_logsoftmax_kernel(%arg0: i32, %arg1: memref<8x32xbf16, #tpu.memory_space<vmem>>, %arg2: memref<32x128xbf16, #tpu.memory_space<vmem>>, %arg3: memref<1x128xf32, #tpu.memory_space<vmem>>, %arg4: memref<8x128xf32, #tpu.memory_space<vmem>>) attributes {dimension_semantics = [#tpu.dimension_semantics<parallel>], iteration_bounds = array<i64: 1>, scalar_prefetch = 0 : i64, scratch_operands = 0 : i64, tpu.core_type = #tpu.core_type<tc>, window_params = [{transform_indices = @transform_0, window_bounds = array<i64: 8, 32>}, {pipeline_mode = #tpu.pipeline_mode<synchronous>, transform_indices = @transform_1, window_bounds = array<i64: 32, 128>}, {pipeline_mode = #tpu.pipeline_mode<synchronous>, transform_indices = @transform_2, window_bounds = array<i64: 1, 128>}, {transform_indices = @transform_3, window_bounds = array<i64: 8, 128>}]} {
    %c0 = arith.constant 0 : index
    %c0_0 = arith.constant 0 : index
    %0 = vector.load %arg1[%c0, %c0_0] : memref<8x32xbf16, #tpu.memory_space<vmem>>, vector<8x32xbf16>
    %c0_1 = arith.constant 0 : index
    %c0_2 = arith.constant 0 : index
    %1 = vector.load %arg2[%c0_1, %c0_2] : memref<32x128xbf16, #tpu.memory_space<vmem>>, vector<32x128xbf16>
    %cst = arith.constant dense<0.000000e+00> : vector<8x128xf32>
    %2 = tpu.matmul %0, %1, %cst {dimension_numbers = #tpu.dot_dimension_numbers<[1], [0], [0], [1], [0, 0, 1, 1], [], []>} : vector<8x32xbf16>, vector<32x128xbf16>, vector<8x128xf32> -> vector<8x128xf32>
    %c0_3 = arith.constant 0 : index
    %c0_4 = arith.constant 0 : index
    %3 = vector.load %arg3[%c0_3, %c0_4] : memref<1x128xf32, #tpu.memory_space<vmem>>, vector<1x128xf32>
    %4 = vector.broadcast %3 : vector<1x128xf32> to vector<8x128xf32>
    %5 = arith.addf %2, %4 : vector<8x128xf32>
    %cst_5 = arith.constant dense<0xFF800000> : vector<8xf32>
    %6 = vector.multi_reduction <maximumf>, %5, %cst_5 [1] : vector<8x128xf32> to vector<8xf32>
    %7 = vector.shape_cast %6 : vector<8xf32> to vector<8x1xf32>
    %8 = vector.broadcast %7 : vector<8x1xf32> to vector<8x128xf32>
    %9 = arith.subf %5, %8 : vector<8x128xf32>
    %10 = math.exp %9 : vector<8x128xf32>
    %cst_6 = arith.constant dense<0.000000e+00> : vector<8xf32>
    %11 = vector.multi_reduction <add>, %10, %cst_6 [1] : vector<8x128xf32> to vector<8xf32>
    %12 = vector.shape_cast %11 : vector<8xf32> to vector<8x1xf32>
    %13 = math.log %12 : vector<8x1xf32>
    %14 = vector.broadcast %13 : vector<8x1xf32> to vector<8x128xf32>
    %15 = arith.subf %9, %14 : vector<8x128xf32>
    %c0_7 = arith.constant 0 : index
    %c0_8 = arith.constant 0 : index
    %16 = vector.load %arg4[%c0_7, %c0_8] : memref<8x128xf32, #tpu.memory_space<vmem>>, vector<8x128xf32>
    tpu.vector_store %arg4[%c0_7, %c0_8], %15 {strides = array<i32>} : memref<8x128xf32, #tpu.memory_space<vmem>>, vector<8x128xf32>,
    return
  }
  func.func @transform_0(%arg0: i32) -> (i32, i32) {
    %c0_i32 = arith.constant 0 : i32
    %c0_i32_0 = arith.constant 0 : i32
    return %arg0, %c0_i32 : i32, i32
  }
  func.func @transform_1(%arg0: i32) -> (i32, i32) {
    %c0_i32 = arith.constant 0 : i32
    %c0_i32_0 = arith.constant 0 : i32
    %c0_i32_1 = arith.constant 0 : i32
    return %c0_i32, %c0_i32_0 : i32, i32
  }
  func.func @transform_2(%arg0: i32) -> (i32, i32) {
    %c0_i32 = arith.constant 0 : i32
    %c0_i32_0 = arith.constant 0 : i32
    %c0_i32_1 = arith.constant 0 : i32
    return %c0_i32, %c0_i32_0 : i32, i32
  }
  func.func @transform_3(%arg0: i32) -> (i32, i32) {
    %c0_i32 = arith.constant 0 : i32
    %c0_i32_0 = arith.constant 0 : i32
    return %arg0, %c0_i32 : i32, i32
  }
}

</mosaic_0001>

<bundles_post_ra>
// kernel: task_model2_forward.1
= control target key start
LH: loop header
LB: loop body
LE: loop exit
PB: predicated region body
PF: predicated region fallthrough
CT: control target
= control target key end

     0   :  { %v157_v1 = vmov 0.0   ;;  %vm158_vm0 = vmmov 0   ;;  %s204_s0 = inlined_call_operand.vmem [shape: bf16[8,32], index: 0, kind: input, shape index: {}]   ;;  %s205_s1 = inlined_call_operand.vmem [shape: bf16[32,128], index: 1, kind: input, shape index: {}]   ;;  %s206_s2 = inlined_call_operand.vmem [shape: f32[1,128], index: 2, kind: input, shape index: {}]   ;;  %s207_s3 = inlined_call_operand.hbm [shape: f32[8,128], index: 3, kind: output, shape index: {}]  }
   0x1   :  { %v127_v0 = vld [vmem:[%s205_s1] sm:$0xff]   ;;  %116 = vmatprep.subr.bf16.mxu0 %v157_v1  ;;  %v128_v2 = vld [vmem:[%s205_s1 + $0x8] sm:$0xff]   ;;  %120 = vmatprep.mubr.msk.bf16.mxu0 %vm158_vm0, %v157_v1 }
   0x2   :  { %117 = vmatpush3.bf16.msra.mxu0 %v127_v0 }
   0x3   :  { %118 = vmatprep.subr.bf16.mxu0 %v157_v1 }
   0x4   :  { %8 = vsyncpa [#allocation3], 0  ;;  %v16_v3 = vld [vmem:[%s204_s0] sm:$0xf]  ;;  %vm40_vm1 = vcmask 261120   ;;  %s159_s0 = smov [#allocation2]  }
   0x5   :  { %v109_v4 = vld [vmem:[%s206_s2] ss:$0 sm:$0xff]  ;;  %s101_s1 = sshll.u32 %s159_s0, 4  ;;  %s102_s1 = int_to_ptr.vmem [resolvable:$true] %s101_s1 }
   0x6   :  { %119 = vmatpush3.bf16.msra.mxu0 %v128_v2  ;;  %s133_s2 = scalar_lea.vmem %s102_s1, 128  ;;  %p138_p1 = scmp.lt.s32.totalorder %s102_s1, %s102_s1 }
   0x7   :  { %p134_p0 = scmp.ne.s32.totalorder %s102_s1, %s133_s2  ;;  %p139_p2 = scmp.lt.s32.totalorder %s133_s2, %s133_s2 }
   0x9   :  { %121 = vmatmul.mubr.msk.bf16.vlgmr.msra.gmra.mrb[0].mxu0 %vm40_vm1, %v16_v3  ;;  %p140_p3 = por %p139_p2, %p138_p1 }
   0xb   :  { %p141_p4 = pnand %p140_p3, %p134_p0 }
  0xdc   :  { %v78_v5 = vpop.f32.mrb[0].mxu0 }
  0xdd   :  { %v79_v6 = vadd.f32 %v109_v4, %v78_v5  ;;  %v122_v7 = vpop.f32.mrb[1].mxu0 }
  0xde   :  { %v81_v8 = vpop.f32.mrb[2].mxu0 }
  0xdf   :  { %84 = vmax.xlane.f32.xlu0 %v79_v6  ;;  %v123_v9 = vpop.f32.mrb[3].mxu0 }
 0x16c   :  { %v85_v10 = vpop.xlane.xlu0 %84 }
 0x16d   :  { %v86_v11 = vsub.f32 %v79_v6, %v85_v10 }
 0x16f   :  { %v87_v12 = vmul.f32 1.442695, %v86_v11 }
 0x171   :  { %129 = vpow2.f32 %v87_v12 }
 0x17b   :  { %v130_v13 = vpop.eup %129 }
 0x17c   :  { %89 = vadd.xlane.f32.xlu0 %v130_v13 }
 0x209   :  { %v90_v14 = vpop.xlane.xlu0 %89 }
 0x20a   :  { %131 = vlog2.f32 %v90_v14 }
 0x214   :  { %v132_v15 = vpop.eup %131 }
 0x215   :  { %v92_v16 = vmul.f32 0.6931472, %v132_v15 }
 0x217   :  { %v93_v17 = vsub.f32 %v86_v11, %v92_v16 }
 0x219   :  { %94 = vst [vmem:[#allocation2] sm:$0xff] %v93_v17 }
 0x21a   :  { %144 = shalt.err (!%p141_p4)
}
 0x21b   :  { %s145_s22 = scalar_lea.hbm %s207_s3, 128 }
 0x21c   :  { %p146_p5 = scmp.ne.s32.totalorder %s207_s3, %s145_s22  ;;  %p149_p6 = scmp.lt.u32.totalorder %s145_s22, %s207_s3 }
 0x21e   :  { %p151_p7 = pnand %p149_p6, %p146_p5 }
 0x220   :  { %154 = shalt.err (!%p151_p7)
}
 0x221   :  { %104 = dma.vmem_to_hbm [thread:$0]  %s102_s1, 128, %s207_s3, [#allocation3]  }
 0x222   :  { %155 = dma.done.wait [#allocation3], 128  }
 0x223   :  { %156 = vsyncadd [#allocation3], 4294967168 }
 0x224   :  { %108 = vsyncpa [#allocation3], 1 }

</bundles_post_ra>
